<compile_context>
chip_gen: v5e
topology: v5e:2x2
jax: 0.10.0
libtpu: 0.0.40
codegen_flags: <defaults>
</compile_context>

<pallas_src>
import math
import functools

import jax
import jax.numpy as jnp
from jax.experimental import pallas as pl
from jax.experimental.pallas import tpu as pltpu

# bf16 MXU operands (f32 accumulation).  jnp.float32 restores exact f32 math.
MXU_DTYPE = jnp.bfloat16


def _pick_block(dim, target, align):
    """Largest block <= target that divides `dim` and is a multiple of `align`;
    falls back to the full dimension (always a legal BlockSpec block).
    NOTE: the full-dim fallback can inflate VMEM for awkward shapes; callers
    assert divisibility and keep vmem_limit_bytes conservative."""
    if dim <= target:
        return dim
    cand = (target // align) * align
    while cand >= align:
        if dim % cand == 0:
            return cand
        cand -= align
    return dim


# -----------------------------------------------------------------------------
# Kernel 1: tiled dense / linear layer  (out = x @ w + b)
# -----------------------------------------------------------------------------
def _linear_kernel(x_ref, w_ref, b_ref, o_ref, acc_ref):
    k = pl.program_id(2)

    @pl.when(k == 0)
    def _():
        acc_ref[...] = jnp.zeros(acc_ref.shape, acc_ref.dtype)

    acc_ref[...] += jnp.dot(
        x_ref[...].astype(MXU_DTYPE),
        w_ref[...].astype(MXU_DTYPE),
        preferred_element_type=jnp.float32,
    )

    @pl.when(k == pl.num_programs(2) - 1)
    def _():
        o_ref[...] = (acc_ref[...] + b_ref[...]).astype(o_ref.dtype)


def linear(x, w, b):
    """x: [M, K], w: [K, N], b: [N] -> [M, N] (f32 out, bf16 MXU operands)."""
    M, K = x.shape
    _, N = w.shape
    b2d = b.reshape(1, N).astype(jnp.float32)

    tm = _pick_block(M, 512, 8)
    tn = _pick_block(N, 512, 128)
    tk = _pick_block(K, 512, 128)
    assert M % tm == 0 and N % tn == 0 and K % tk == 0

    gm, gn, gk = M // tm, N // tn, K // tk

    cost = pl.CostEstimate(
        flops=2 * M * N * K,
        transcendentals=0,
        # x is re-read once per output-column tile, w once per output-row tile.
        bytes_accessed=4 * (M * K * gn + K * N * gm + M * N + N * gm * gn),
    )

    return pl.pallas_call(
        _linear_kernel,
        out_shape=jax.ShapeDtypeStruct((M, N), jnp.float32),
        grid_spec=pltpu.PrefetchScalarGridSpec(
            num_scalar_prefetch=0,
            grid=(gm, gn, gk),
            in_specs=[
                pl.BlockSpec((tm, tk), lambda i, j, k: (i, k)),
                pl.BlockSpec((tk, tn), lambda i, j, k: (k, j)),
                pl.BlockSpec((1, tn), lambda i, j, k: (0, j)),
            ],
            out_specs=pl.BlockSpec((tm, tn), lambda i, j, k: (i, j)),
            scratch_shapes=[pltpu.VMEM((tm, tn), jnp.float32)],
        ),
        compiler_params=pltpu.CompilerParams(
            dimension_semantics=("parallel", "parallel", "arbitrary"),
            vmem_limit_bytes=32 * 1024 * 1024,
        ),
        cost_estimate=cost,
    )(x, w, b2d)


# -----------------------------------------------------------------------------
# Kernel 2: flash-style multi-head scaled dot-product attention.
# Grid = (batch, q-tile, kv-tile); all heads of one batch element per step.
# Online softmax (running max/sum + f32 accumulator) bounds VMEM independent
# of S.  Only `values` is written; attention probabilities never leave VMEM.
# -----------------------------------------------------------------------------
def _flash_mha_kernel(q_ref, k_ref, v_ref, mask_ref, o_ref,
                      m_sc, l_sc, acc_sc, *, scale):
    ki = pl.program_id(2)

    @pl.when(ki == 0)
    def _():
        m_sc[...] = jnp.full(m_sc.shape, -jnp.inf, dtype=m_sc.dtype)
        l_sc[...] = jnp.zeros(l_sc.shape, l_sc.dtype)
        acc_sc[...] = jnp.zeros(acc_sc.shape, acc_sc.dtype)

    # scale folded into q (hd multiplies per row instead of S).
    q = (q_ref[0] * scale).astype(MXU_DTYPE)      # (H, tq, hd)
    k = k_ref[0].astype(MXU_DTYPE)                # (H, tk, hd)
    v = v_ref[0].astype(MXU_DTYPE)                # (H, tk, hd)

    # scores: (H, tq, tk) -- batched contraction over head_dim on the MXU,
    # f32 accumulation; no explicit transpose materialized.
    s = jnp.einsum("hqd,hkd->hqk", q, k, preferred_element_type=jnp.float32)
    s = s + mask_ref[...][None, :, :]             # additive mask (shared over heads)

    # online softmax -- all statistics strictly f32.
    m_prev = m_sc[...]
    m_new = jnp.maximum(m_prev, jnp.max(s, axis=-1, keepdims=True))
    alpha = jnp.exp(m_prev - m_new)
    p = jnp.exp(s - m_new)                        # (H, tq, tk) f32
    l_sc[...] = alpha * l_sc[...] + jnp.sum(p, axis=-1, keepdims=True)
    acc_sc[...] = alpha * acc_sc[...] + jnp.einsum(
        "hqk,hkd->hqd", p.astype(MXU_DTYPE), v,
        preferred_element_type=jnp.float32)
    m_sc[...] = m_new

    @pl.when(ki == pl.num_programs(2) - 1)
    def _():
        # 1/denom folded into the output scaling; approx recip runs on the EUP
        # slot (off the VPU critical path).
        o_ref[0] = (acc_sc[...] *
                    pl.reciprocal(l_sc[...], approx=True)).astype(o_ref.dtype)


def mha_attention_pallas(q, k, v, mask):
    """q/k/v: [B, H, S, hd]; mask: [S, S] additive. Returns values [B, H, S, hd]."""
    B, H, S, hd = q.shape
    scale = 1.0 / math.sqrt(hd)

    tq = _pick_block(S, 256, 8)     # second-to-last dim of q/mask blocks
    tk = _pick_block(S, 256, 128)   # last dim of the mask block -> 128-aligned
    assert S % tq == 0 and S % tk == 0
    n_q, n_kv = S // tq, S // tk

    kernel = functools.partial(_flash_mha_kernel, scale=scale)

    cost = pl.CostEstimate(
        flops=4 * B * H * S * S * hd,               # QK^T and PV matmuls
        transcendentals=B * H * S * S + B * H * S * n_kv,   # exp(s) + rescale exps
        bytes_accessed=4 * (B * H * S * hd                  # q (once per (b,qi))
                            + 2 * n_q * B * H * S * hd      # k and v per kv step
                            + B * S * S                     # mask tiles
                            + B * H * S * hd),              # output
    )

    return pl.pallas_call(
        kernel,
        out_shape=jax.ShapeDtypeStruct((B, H, S, hd), jnp.float32),
        grid_spec=pltpu.PrefetchScalarGridSpec(
            num_scalar_prefetch=0,
            grid=(B, n_q, n_kv),
            in_specs=[
                # q tile: constant across the kv axis -> fetched once per (b, qi)
                pl.BlockSpec((1, H, tq, hd), lambda b, qi, ki: (b, 0, qi, 0)),
                pl.BlockSpec((1, H, tk, hd), lambda b, qi, ki: (b, 0, ki, 0)),
                pl.BlockSpec((1, H, tk, hd), lambda b, qi, ki: (b, 0, ki, 0)),
                # shared [S, S] mask, tiled (qi, ki); independent of batch/head
                pl.BlockSpec((tq, tk), lambda b, qi, ki: (qi, ki)),
            ],
            # output block index independent of ki -> accumulator pattern
            out_specs=pl.BlockSpec((1, H, tq, hd), lambda b, qi, ki: (b, 0, qi, 0)),
            scratch_shapes=[
                pltpu.VMEM((H, tq, 1), jnp.float32),    # running max
                pltpu.VMEM((H, tq, 1), jnp.float32),    # running sum
                pltpu.VMEM((H, tq, hd), jnp.float32),   # output accumulator
            ],
        ),
        compiler_params=pltpu.CompilerParams(
            dimension_semantics=("parallel", "parallel", "arbitrary"),
            vmem_limit_bytes=32 * 1024 * 1024,
        ),
        cost_estimate=cost,
    )(q, k, v, mask)


# -----------------------------------------------------------------------------
# MultiheadAttention forward (glue in plain JAX, compute in Pallas kernels)
# -----------------------------------------------------------------------------
def multihead_attention_forward(params, x, mask, *, num_heads):
    """x: [B, S, input_dim]; mask: [S, S] additive mask.

    Returns (out [B, S, dim_model], values [B, S, dim_model]) matching the
    PyTorch module's forward (including the head-interleaving reshape)."""
    B, S, input_dim = x.shape
    w_qkv, b_qkv, w_out, b_out = (params["w_qkv"], params["b_qkv"],
                                  params["w_out"], params["b_out"])
    dim_model = w_qkv.shape[1] // 3
    head_dim = dim_model // num_heads

    # qkv projection: [B*S, input_dim] @ [input_dim, 3*dim_model]
    qkv = linear(x.reshape(B * S, input_dim), w_qkv, b_qkv)       # [B*S, 3*dm]

    # Single layout transpose to [3, B, H, S, hd]; q/k/v become contiguous
    # slabs -> the kernel never fetches the packed 3*hd lane dimension.
    qkv5 = jnp.transpose(qkv.reshape(B, S, num_heads, 3, head_dim),
                         (3, 0, 2, 1, 4))                         # [3,B,H,S,hd]
    q, k, v = qkv5[0], qkv5[1], qkv5[2]                           # [B,H,S,hd] each

    values4 = mha_attention_pallas(q, k, v, mask.astype(jnp.float32))

    # PyTorch does values.reshape(B, S, H*hd) on the [B, H, S, hd] tensor with
    # NO head permute -- identical row-major flat reshape here.
    values = values4.reshape(B, S, num_heads * head_dim)          # [B, S, dm]

    out = linear(values.reshape(B * S, dim_model), w_out, b_out)  # [B*S, dm]
    return out.reshape(B, S, dim_model), values


# -----------------------------------------------------------------------------
# Pure-JAX reference (mirrors the PyTorch code) for correctness checking
# -----------------------------------------------------------------------------
def reference_forward(params, x, mask, *, num_heads):
    B, S, input_dim = x.shape
    w_qkv, b_qkv, w_out, b_out = (params["w_qkv"], params["b_qkv"],
                                  params["w_out"], params["b_out"])
    dim_model = w_qkv.shape[1] // 3
    head_dim = dim_model // num_heads

    qkv = x.reshape(B * S, input_dim) @ w_qkv + b_qkv
    qkv = qkv.reshape(B, S, num_heads, 3 * head_dim)
    qkv = jnp.transpose(qkv, (0, 2, 1, 3))
    q, k, v = jnp.split(qkv, 3, axis=-1)

    scaled = jnp.einsum("bhqd,bhkd->bhqk", q, k) / math.sqrt(head_dim)
    scaled = scaled + mask[None, None, :, :]
    attn = jax.nn.softmax(scaled, axis=-1)
    values = jnp.einsum("bhqk,bhkd->bhqd", attn, v)
    values = values.reshape(B, S, num_heads * head_dim)
    out = values.reshape(B * S, dim_model) @ w_out + b_out
    return out.reshape(B, S, dim_model), values


# -----------------------------------------------------------------------------
# Deterministic parameter init (nn.Linear-style uniform(-1/sqrt(fan_in), ..))
# -----------------------------------------------------------------------------
def init_params(key, input_dim, dim_model):
    k1, k2, k3, k4 = jax.random.split(key, 4)
    bound_qkv = 1.0 / math.sqrt(input_dim)
    bound_out = 1.0 / math.sqrt(dim_model)
    return {
        # stored already transposed: [in, out]
        "w_qkv": jax.random.uniform(k1, (input_dim, 3 * dim_model),
                                    jnp.float32, -bound_qkv, bound_qkv),
        "b_qkv": jax.random.uniform(k2, (3 * dim_model,),
                                    jnp.float32, -bound_qkv, bound_qkv),
        "w_out": jax.random.uniform(k3, (dim_model, dim_model),
                                    jnp.float32, -bound_out, bound_out),
        "b_out": jax.random.uniform(k4, (dim_model,),
                                    jnp.float32, -bound_out, bound_out),
    }


if __name__ == "__main__":
    B, S, INPUT_DIM, DIM_MODEL, NUM_HEADS = 2, 8, 32, 32, 4

    root = jax.random.PRNGKey(0)
    kx, kp = jax.random.split(root)

    x = jax.random.normal(kx, (B, S, INPUT_DIM), dtype=jnp.float32)
    params = init_params(kp, INPUT_DIM, DIM_MODEL)

    # additive causal mask [S, S] (0 on/below diagonal, large negative above)
    neg = jnp.full((S, S), -1e9, dtype=jnp.float32)
    mask = jnp.where(jnp.tril(jnp.ones((S, S), dtype=bool)), 0.0, neg)

    out, values = multihead_attention_forward(params, x, mask,
                                              num_heads=NUM_HEADS)
    out = jax.block_until_ready(out)
    values = jax.block_until_ready(values)

    out_ref, values_ref = reference_forward(params, x, mask,
                                            num_heads=NUM_HEADS)
    assert out.shape == (B, S, DIM_MODEL)
    assert values.shape == (B, S, DIM_MODEL)
    assert bool(jnp.all(jnp.isfinite(out))) and bool(jnp.all(jnp.isfinite(values)))
    # tolerance accounts for bf16 MXU operands (f32 accumulation) and the EUP
    # approximate reciprocal in the softmax normalization.
    assert jnp.allclose(values, values_ref, atol=5e-2, rtol=5e-2)
    assert jnp.allclose(out, out_ref, atol=5e-2, rtol=5e-2)

    print("KERNEL_OK")
</pallas_src>

<mosaic_0001>
module attributes {stable_mosaic.version = 11 : i64} {
  func.func @_linear_kernel(%arg0: i32, %arg1: i32, %arg2: i32, %arg3: memref<16x32xf32, #tpu.memory_space<vmem>>, %arg4: memref<32x96xf32, #tpu.memory_space<vmem>>, %arg5: memref<1x96xf32, #tpu.memory_space<vmem>>, %arg6: memref<16x96xf32, #tpu.memory_space<vmem>>, %arg7: memref<16x96xf32, #tpu.memory_space<vmem>>) attributes {dimension_semantics = [#tpu.dimension_semantics<parallel>, #tpu.dimension_semantics<parallel>, #tpu.dimension_semantics<arbitrary>], iteration_bounds = array<i64: 1, 1, 1>, scalar_prefetch = 0 : i64, scratch_operands = 1 : i64, tpu.core_type = #tpu.core_type<tc>, window_params = [{transform_indices = @transform_0, window_bounds = array<i64: 16, 32>}, {transform_indices = @transform_1, window_bounds = array<i64: 32, 96>}, {transform_indices = @transform_2, window_bounds = array<i64: 1, 96>}, {transform_indices = @transform_3, window_bounds = array<i64: 16, 96>}]} {
    %c0_i32 = arith.constant 0 : i32
    %0 = arith.cmpi eq, %arg2, %c0_i32 : i32
    %1 = arith.extui %0 : i1 to i32
    %c0_i32_0 = arith.constant 0 : i32
    %2 = arith.cmpi ne, %1, %c0_i32_0 : i32
    scf.if %2 {
      %cst_10 = arith.constant 0.000000e+00 : f32
      %14 = vector.broadcast %cst_10 : f32 to vector<16x96xf32>
      %c0_11 = arith.constant 0 : index
      %c0_12 = arith.constant 0 : index
      %15 = vector.load %arg7[%c0_11, %c0_12] : memref<16x96xf32, #tpu.memory_space<vmem>>, vector<16x96xf32>
      tpu.vector_store %arg7[%c0_11, %c0_12], %14 {strides = array<i32>} : memref<16x96xf32, #tpu.memory_space<vmem>>, vector<16x96xf32>,
    } else {
    }
    %c0 = arith.constant 0 : index
    %c0_1 = arith.constant 0 : index
    %3 = vector.load %arg7[%c0, %c0_1] : memref<16x96xf32, #tpu.memory_space<vmem>>, vector<16x96xf32>
    %c0_2 = arith.constant 0 : index
    %c0_3 = arith.constant 0 : index
    %4 = vector.load %arg3[%c0_2, %c0_3] : memref<16x32xf32, #tpu.memory_space<vmem>>, vector<16x32xf32>
    %5 = arith.truncf %4 : vector<16x32xf32> to vector<16x32xbf16>
    %c0_4 = arith.constant 0 : index
    %c0_5 = arith.constant 0 : index
    %6 = vector.load %arg4[%c0_4, %c0_5] : memref<32x96xf32, #tpu.memory_space<vmem>>, vector<32x96xf32>
    %7 = arith.truncf %6 : vector<32x96xf32> to vector<32x96xbf16>
    %cst = arith.constant dense<0.000000e+00> : vector<16x96xf32>
    %8 = tpu.matmul %5, %7, %cst {dimension_numbers = #tpu.dot_dimension_numbers<[1], [0], [0], [1], [0, 0, 1, 1], [], []>} : vector<16x32xbf16>, vector<32x96xbf16>, vector<16x96xf32> -> vector<16x96xf32>
    %9 = arith.addf %3, %8 : vector<16x96xf32>
    %c0_6 = arith.constant 0 : index
    %c0_7 = arith.constant 0 : index
    %10 = vector.load %arg7[%c0_6, %c0_7] : memref<16x96xf32, #tpu.memory_space<vmem>>, vector<16x96xf32>
    tpu.vector_store %arg7[%c0_6, %c0_7], %9 {strides = array<i32>} : memref<16x96xf32, #tpu.memory_space<vmem>>, vector<16x96xf32>,
    %c0_i32_8 = arith.constant 0 : i32
    %11 = arith.cmpi eq, %arg2, %c0_i32_8 : i32
    %12 = arith.extui %11 : i1 to i32
    %c0_i32_9 = arith.constant 0 : i32
    %13 = arith.cmpi ne, %12, %c0_i32_9 : i32
    scf.if %13 {
      %c0_10 = arith.constant 0 : index
      %c0_11 = arith.constant 0 : index
      %14 = vector.load %arg7[%c0_10, %c0_11] : memref<16x96xf32, #tpu.memory_space<vmem>>, vector<16x96xf32>
      %c0_12 = arith.constant 0 : index
      %c0_13 = arith.constant 0 : index
      %15 = vector.load %arg5[%c0_12, %c0_13] : memref<1x96xf32, #tpu.memory_space<vmem>>, vector<1x96xf32>
      %16 = vector.broadcast %15 : vector<1x96xf32> to vector<16x96xf32>
      %17 = arith.addf %14, %16 : vector<16x96xf32>
      %c0_14 = arith.constant 0 : index
      %c0_15 = arith.constant 0 : index
      %18 = vector.load %arg6[%c0_14, %c0_15] : memref<16x96xf32, #tpu.memory_space<vmem>>, vector<16x96xf32>
      tpu.vector_store %arg6[%c0_14, %c0_15], %17 {strides = array<i32>} : memref<16x96xf32, #tpu.memory_space<vmem>>, vector<16x96xf32>,
    } else {
    }
    return
  }
  func.func @transform_0(%arg0: i32, %arg1: i32, %arg2: i32) -> (i32, i32) {
    %c0_i32 = arith.constant 0 : i32
    return %arg0, %arg2 : i32, i32
  }
  func.func @transform_1(%arg0: i32, %arg1: i32, %arg2: i32) -> (i32, i32) {
    %c0_i32 = arith.constant 0 : i32
    return %arg2, %arg1 : i32, i32
  }
  func.func @transform_2(%arg0: i32, %arg1: i32, %arg2: i32) -> (i32, i32) {
    %c0_i32 = arith.constant 0 : i32
    %c0_i32_0 = arith.constant 0 : i32
    return %c0_i32, %arg1 : i32, i32
  }
  func.func @transform_3(%arg0: i32, %arg1: i32, %arg2: i32) -> (i32, i32) {
    %c0_i32 = arith.constant 0 : i32
    return %arg0, %arg1 : i32, i32
  }
}

</mosaic_0001>

<bundles_post_ra>
// kernel: tpu_custom_call.1
= control target key start
LH: loop header
LB: loop body
LE: loop exit
PB: predicated region body
PF: predicated region fallthrough
CT: control target
= control target key end

     0   :  { %8 = vsyncpa [#allocation4], 0  ;;  %s261_s0 = inlined_call_operand.hbm [shape: f32[16,32], index: 0, kind: input, shape index: {}]   ;;  %s262_s1 = inlined_call_operand.hbm [shape: f32[32,96], index: 1, kind: input, shape index: {}]   ;;  %s263_s2 = inlined_call_operand.vmem [shape: f32[1,96], index: 2, kind: input, shape index: {}]   ;;  %s264_s3 = inlined_call_operand.hbm [shape: f32[16,96], index: 3, kind: output, shape index: {}]  }
   0x1   :  { %9 = vsyncpa [#allocation7], 0 }
   0x2   :  { %10 = vsyncpa [#allocation5], 0  ;;  %s15_s14 = sshll.u32 %s261_s0, 4  ;;  %s208_s15 = smov [#allocation3]   ;;  %s16_s14 = int_to_ptr.hbm [resolvable:$true] %s15_s14 }
   0x3   :  { %s17_s16 = sshll.u32 %s208_s15, 4  ;;  %s28_s19 = sshll.u32 %s262_s1, 4  ;;  %s18_s16 = int_to_ptr.vmem [resolvable:$true] %s17_s16  ;;  %s29_s19 = int_to_ptr.hbm [resolvable:$true] %s28_s19 }
   0x4   :  { %s209_s20 = smov 128   ;;  %s210_s21 = smov 8  }
   0x5   :  { %23 = dma.hbm_to_vmem [thread:$0]  %s16_s14, 256, %s18_s16, [#allocation4], %s209_s20, %s209_s20, %s210_s21  }
   0x6   :  { %s211_s22 = smov [#allocation6]  }
   0x7   :  { %s30_s23 = sshll.u32 %s211_s22, 4  ;;  %s31_s23 = int_to_ptr.vmem [resolvable:$true] %s30_s23 }
   0x8   :  { %36 = dma.hbm_to_vmem [thread:$0]  %s29_s19, 512, %s31_s23, [#allocation7], %s209_s20, %s209_s20, %s210_s21  }
   0x9   :  { %202 = dma.done.wait [#allocation4], 256  }
   0xa   :  { %203 = vsyncadd [#allocation4], 4294967040 }
   0xb   :  { %204 = dma.done.wait [#allocation7], 512  }
   0xc   :  { %205 = vsyncadd [#allocation7], 4294966784  ;;  %vm52_vm0 = vcmask 785408   ;;  %v212_v0 = vmov 0.0   ;;  %v62_v1 = vld [vmem:[#allocation6 + $0x10] sm:$0xff]  ;;  %v63_v2 = vld [vmem:[#allocation6 + $0x18] sm:$0xff] }
   0xd   :  { %53 = vst.msk [vmem:[#allocation2] sm:$0xff] %vm52_vm0, %v212_v0  ;;  %v60_v3 = vld [vmem:[#allocation6] sm:$0xff]  ;;  %v65_v4 = vpack.c.bf16 %v63_v2, %v62_v1  ;;  %v61_v5 = vld [vmem:[#allocation6 + $0x8] sm:$0xff]  ;;  %v57_v7 = vld [vmem:[#allocation3] sm:$0xff]  ;;  %vm66_vm1 = vcmask 261120   ;;  %s213_s24 = smov [#allocation8]  }
   0xe   :  { %54 = vst.msk [vmem:[#allocation2 + $0x8] sm:$0xff] %vm52_vm0, %v212_v0  ;;  %v64_v6 = vpack.c.bf16 %v61_v5, %v60_v3  ;;  %v58_v8 = vld [vmem:[#allocation3 + $0x8] sm:$0xff]  ;;  %v129_v14 = vld [vmem:[%s263_s2] ss:$0 sm:$0xff]  ;;  %s106_s25 = sshll.u32 %s213_s24, 4  ;;  %s108_s28 = sshll.u32 %s264_s3, 4  ;;  %s107_s25 = int_to_ptr.vmem [resolvable:$true] %s106_s25  ;;  %s109_s28 = int_to_ptr.hbm [resolvable:$true] %s108_s28 }
   0xf   :  { %76 = vmatpush.bf16.msra.mxu0 %v65_v4  ;;  %v59_v9 = vpack.c.bf16 %v58_v8, %v57_v7 }
  0x13   :  { %77 = vmatpush.bf16.msra.mxu0 %v64_v6 }
  0x14   :  { %v55_v10 = vld [vmem:[#allocation2] sm:$0xff] }
  0x15   :  { %v56_v13 = vld [vmem:[#allocation2 + $0x8] sm:$0xff] }
  0x16   :  { %122 = vmatmul.msk.bf16.vlgmr.msra.gmra.mxu0 %vm66_vm1, %v59_v9 }
  0x93   :  { %v79_v11 = vpop.f32.mrf.mxu0 }
  0x94   :  { %v84_v12 = vadd.f32 %v79_v11, %v55_v10 }
  0x96   :  { %87 = vst.msk [vmem:[#allocation2] sm:$0xff] %vm52_vm0, %v84_v12 }
  0x9b   :  { %v81_v15 = vpop.f32.mrf.mxu0 }
  0x9c   :  { %v85_v16 = vadd.f32 %v81_v15, %v56_v13 }
  0x9d   :  { %v92_v17 = vld [vmem:[#allocation2] sm:$0xff] }
  0x9e   :  { %88 = vst.msk [vmem:[#allocation2 + $0x8] sm:$0xff] %vm52_vm0, %v85_v16  ;;  %v98_v18 = vadd.f32 %v129_v14, %v92_v17 }
  0xa0   :  { %100 = vst.msk [vmem:[#allocation8] sm:$0xff] %vm52_vm0, %v98_v18 }
  0xa5   :  { %v93_v19 = vld [vmem:[#allocation2 + $0x8] sm:$0xff] }
  0xa6   :  { %v99_v20 = vadd.f32 %v129_v14, %v93_v19 }
  0xa8   :  { %101 = vst.msk [vmem:[#allocation8 + $0x8] sm:$0xff] %vm52_vm0, %v99_v20 }
  0xa9   :  { %114 = dma.vmem_to_hbm [thread:$0]  %s107_s25, 256, %s109_s28, [#allocation5], %s209_s20, %s209_s20, %s210_s21  }
  0xaa   :  { %206 = dma.done.wait [#allocation5], 256  }
  0xab   :  { %207 = vsyncadd [#allocation5], 4294967040 }
  0xac   :  { %119 = vsyncpa [#allocation4], 1 }
  0xad   :  { %120 = vsyncpa [#allocation7], 1 }
  0xae   :  { %121 = vsyncpa [#allocation5], 1 }

</bundles_post_ra>
